<compile_context>
chip_gen: v5e
topology: v5e:2x2
jax: 0.10.0
libtpu: 0.0.40
codegen_flags: <defaults>
</compile_context>

<pallas_src>
import jax
import jax.numpy as jnp
from jax.experimental import pallas as pl
from jax.experimental.pallas import tpu as pltpu

LANES = 128
SUBLANES = 8
MAX_TILE_ROWS = 4096  # 4096 x 128 x 4 B = 2 MiB per input per grid step


def _disc_loss_kernel(real_ref, fake_ref, out_ref):
    """Writes one (8, 128) partial sum of  -log(real) - log(1 - fake)  per step.

    Padding is neutral (real pad = 1.0, fake pad = 0.0), so no validity mask
    is needed anywhere in the kernel.
    """
    tile_rows = real_ref.shape[0]  # static

    real = real_ref[...].astype(jnp.float32)
    fake = fake_ref[...].astype(jnp.float32)

    # BCE(real, ones) -> -log(real);  BCE(fake, zeros) -> -log(1 - fake).
    # torch.nn.BCELoss clamps each log term at -100.
    log_r = jnp.maximum(jnp.log(real), -100.0)
    log_1mf = jnp.maximum(jnp.log1p(-fake), -100.0)
    terms = -(log_r + log_1mf)

    # (tile_rows, 128) -> (tile_rows//8, 8, 128) keeps vreg tiles intact, so
    # the axis-0 sum is pure VPU vreg adds (no cross-lane XLU work).
    out_ref[...] = jnp.sum(terms.reshape(tile_rows // SUBLANES, SUBLANES, LANES), axis=0)


def _prepare(x, pad_value, padded_n):
    """Flatten row-major to (padded_n//128, 128); neutral-pad only if needed."""
    flat = x.reshape(-1)
    n = flat.shape[0]
    if padded_n != n:
        # Neutral pad: padded elements contribute exactly 0 to the loss sum.
        flat = jnp.pad(flat, (0, padded_n - n), constant_values=pad_value)
    return flat.reshape(padded_n // LANES, LANES)


def discriminator_loss(discriminated_fake, discriminated_real):
    """real_loss = BCE(real, ones); fake_loss = BCE(fake, zeros); return sum."""
    assert discriminated_fake.size == discriminated_real.size, (
        "kernel assumes fake/real have the same number of elements"
    )
    n = int(discriminated_real.size)

    # Choose the block, then pad up to a whole number of blocks so every grid
    # step sees fully-valid (or neutral-padded) data — no masks, no partial
    # last block reading garbage.
    rows_min = pl.cdiv(n, LANES)
    rows_min8 = pl.cdiv(rows_min, SUBLANES) * SUBLANES
    tile_rows = min(MAX_TILE_ROWS, rows_min8)
    # Give v7x's two TensorCores at least one block each when there is enough
    # work to split (negligible cost on single-TC v5e/v6e).
    if rows_min8 > SUBLANES and pl.cdiv(rows_min8, tile_rows) < 2:
        tile_rows = pl.cdiv(tile_rows // 2, SUBLANES) * SUBLANES
    num_blocks = pl.cdiv(rows_min8, tile_rows)
    rows = num_blocks * tile_rows
    padded_n = rows * LANES

    # Neutral padding values: real -> 1.0 gives -log(1) = 0;
    # fake -> 0.0 gives -log1p(-0) = 0.
    real2d = _prepare(discriminated_real, 1.0, padded_n)
    fake2d = _prepare(discriminated_fake, 0.0, padded_n)

    in_bytes = rows * LANES * (real2d.dtype.itemsize + fake2d.dtype.itemsize)
    out_bytes = num_blocks * SUBLANES * LANES * 4

    partials = pl.pallas_call(
        _disc_loss_kernel,
        out_shape=jax.ShapeDtypeStruct((num_blocks * SUBLANES, LANES), jnp.float32),
        grid_spec=pltpu.PrefetchScalarGridSpec(
            num_scalar_prefetch=0,
            grid=(num_blocks,),
            in_specs=[
                pl.BlockSpec((tile_rows, LANES), lambda i: (i, 0)),
                pl.BlockSpec((tile_rows, LANES), lambda i: (i, 0)),
            ],
            out_specs=pl.BlockSpec((SUBLANES, LANES), lambda i: (i, 0)),
        ),
        compiler_params=pltpu.CompilerParams(
            dimension_semantics=("parallel",),
        ),
        cost_estimate=pl.CostEstimate(
            flops=6 * n, transcendentals=2 * n, bytes_accessed=in_bytes + out_bytes
        ),
    )(real2d, fake2d)

    # Since n_real == n_fake (asserted), the two BCE means share one divisor.
    return jnp.sum(partials) * jnp.float32(1.0 / n)


def _reference(discriminated_fake, discriminated_real):
    real = discriminated_real.astype(jnp.float32)
    fake = discriminated_fake.astype(jnp.float32)
    real_loss = -jnp.mean(jnp.maximum(jnp.log(real), -100.0))
    fake_loss = -jnp.mean(jnp.maximum(jnp.log(1.0 - fake), -100.0))
    return real_loss + fake_loss


if __name__ == "__main__":
    key = jax.random.PRNGKey(0)
    k1, k2 = jax.random.split(key)
    # Discriminator outputs: probabilities in (0, 1), NCHW-shaped.
    shape = (2, 4, 16, 16)
    discriminated_fake = jax.random.uniform(k1, shape, jnp.float32, minval=0.01, maxval=0.99)
    discriminated_real = jax.random.uniform(k2, shape, jnp.float32, minval=0.01, maxval=0.99)

    loss_fn = jax.jit(discriminator_loss)
    loss = jax.block_until_ready(loss_fn(discriminated_fake, discriminated_real))
    ref = _reference(discriminated_fake, discriminated_real)
    assert jnp.allclose(loss, ref, rtol=1e-5, atol=1e-5), (loss, ref)
    print("KERNEL_OK")
</pallas_src>

<mosaic_0001>
module attributes {stable_mosaic.version = 11 : i64} {
  func.func @_disc_loss_kernel(%arg0: i32, %arg1: memref<8x128xf32, #tpu.memory_space<vmem>>, %arg2: memref<8x128xf32, #tpu.memory_space<vmem>>, %arg3: memref<8x128xf32, #tpu.memory_space<vmem>>) attributes {dimension_semantics = [#tpu.dimension_semantics<parallel>], iteration_bounds = array<i64: 2>, scalar_prefetch = 0 : i64, scratch_operands = 0 : i64, tpu.core_type = #tpu.core_type<tc>, window_params = [{transform_indices = @transform_0, window_bounds = array<i64: 8, 128>}, {transform_indices = @transform_1, window_bounds = array<i64: 8, 128>}, {transform_indices = @transform_2, window_bounds = array<i64: 8, 128>}]} {
    %c0 = arith.constant 0 : index
    %c0_0 = arith.constant 0 : index
    %0 = vector.load %arg1[%c0, %c0_0] : memref<8x128xf32, #tpu.memory_space<vmem>>, vector<8x128xf32>
    %c0_1 = arith.constant 0 : index
    %c0_2 = arith.constant 0 : index
    %1 = vector.load %arg2[%c0_1, %c0_2] : memref<8x128xf32, #tpu.memory_space<vmem>>, vector<8x128xf32>
    %2 = math.log %0 : vector<8x128xf32>
    %cst = arith.constant -1.000000e+02 : f32
    %3 = vector.broadcast %cst : f32 to vector<8x128xf32>
    %4 = arith.maximumf %2, %3 : vector<8x128xf32>
    %cst_3 = arith.constant 0.000000e+00 : f32
    %5 = vector.broadcast %cst_3 : f32 to vector<8x128xf32>
    %6 = arith.subf %5, %1 : vector<8x128xf32>
    %7 = math.log1p %6 : vector<8x128xf32>
    %cst_4 = arith.constant -1.000000e+02 : f32
    %8 = vector.broadcast %cst_4 : f32 to vector<8x128xf32>
    %9 = arith.maximumf %7, %8 : vector<8x128xf32>
    %10 = arith.addf %4, %9 : vector<8x128xf32>
    %cst_5 = arith.constant 0.000000e+00 : f32
    %11 = vector.broadcast %cst_5 : f32 to vector<8x128xf32>
    %12 = arith.subf %11, %10 : vector<8x128xf32>
    %13 = vector.shape_cast %12 : vector<8x128xf32> to vector<1x8x128xf32>
    %cst_6 = arith.constant dense<0.000000e+00> : vector<8x128xf32>
    %14 = vector.multi_reduction <add>, %13, %cst_6 [0] : vector<1x8x128xf32> to vector<8x128xf32>
    %c0_7 = arith.constant 0 : index
    %c0_8 = arith.constant 0 : index
    %15 = vector.load %arg3[%c0_7, %c0_8] : memref<8x128xf32, #tpu.memory_space<vmem>>, vector<8x128xf32>
    tpu.vector_store %arg3[%c0_7, %c0_8], %14 {strides = array<i32>} : memref<8x128xf32, #tpu.memory_space<vmem>>, vector<8x128xf32>,
    return
  }
  func.func @transform_0(%arg0: i32) -> (i32, i32) {
    %c0_i32 = arith.constant 0 : i32
    %c0_i32_0 = arith.constant 0 : i32
    return %arg0, %c0_i32 : i32, i32
  }
  func.func @transform_1(%arg0: i32) -> (i32, i32) {
    %c0_i32 = arith.constant 0 : i32
    %c0_i32_0 = arith.constant 0 : i32
    return %arg0, %c0_i32 : i32, i32
  }
  func.func @transform_2(%arg0: i32) -> (i32, i32) {
    %c0_i32 = arith.constant 0 : i32
    %c0_i32_0 = arith.constant 0 : i32
    return %arg0, %c0_i32 : i32, i32
  }
}

</mosaic_0001>

<bundles_post_ra>
// kernel: discriminator_loss.1
= control target key start
LH: loop header
LB: loop body
LE: loop exit
PB: predicated region body
PF: predicated region fallthrough
CT: control target
= control target key end

     0   :  { %s286_s9 = smov 0   ;;  %s306_s0 = inlined_call_operand.vmem [shape: f32[16,128], index: 0, kind: input, shape index: {}]   ;;  %s307_s1 = inlined_call_operand.vmem [shape: f32[16,128], index: 1, kind: input, shape index: {}]   ;;  %s308_s2 = inlined_call_operand.vmem [shape: f32[16,128], index: 2, kind: output, shape index: {}]  }
   0x1 LB: > { %s241_s10 = sadd.s32 4294967295, %s269_s9   ;;  %p245_p0 = scmp.ge.s32.totalorder %s269_s9, 1  ;;  %s269_s9 = sphi %s286_s9, %s12_s9  }
   0x2   : > { %p120_p1 = scmp.lt.s32.totalorder %s269_s9, 3 }
   0x4   : > { %p121_p2 = pnand %p245_p0, %p120_p1 }
   0x5   : > { %p144_p3 = scmp.lt.s32.totalorder (!%p121_p2), %s241_s10, 1 }
   0x6   : > { %124 = sbr.rel (%p121_p2) target bundleno = 37 (0x25), region = 28 }
   0xb   : > { %s310_s10 = smov (!%p144_p3, %s241_s10), 1 }
   0xc   : > { %s246_s11 = sshll.u32 %s310_s10, 3 }
   0xd   : > { %s147_s14 = scalar_lea.vmem %s306_s0, %s246_s11  ;;  %s151_s17 = scalar_lea.vmem %s307_s1, %s246_s11 }
   0xe   : > { %v156_v0 = vld [vmem:[%s147_s14] sm:$0xff]  ;;  %s155_s20 = scalar_lea.vmem %s308_s2, %s246_s11 }
   0xf   : > { %v157_v1 = vld [vmem:[%s151_s17] sm:$0xff]  ;;  %259 = vlog2.f32 %v156_v0 }
  0x10   : > { %v161_v2 = vsub.f32 0.0, %v157_v1 }
  0x12   : > { %v162_v3 = vadd.f32 1.0, %v161_v2  ;;  %v165_v4 = vmul.f32 -0.5, %v161_v2  ;;  %v168_v7 = vand.u32 2147483647, %v161_v2 }
  0x14   : > { %261 = vlog2.f32 %v162_v3  ;;  %v166_v5 = vadd.f32 1.0, %v165_v4  ;;  %vm169_vm0 = vcmp.lt.f32.partialorder %v168_v7, 0.0004427343 }
  0x15   : > { %v260_v6 = vpop.eup %259 }
  0x16   : > { %v159_v8 = vmul.f32 0.6931472, %v260_v6  ;;  %v167_v9 = vmul.f32 %v166_v5, %v161_v2 }
  0x18   : > { %v160_v12 = vmax.f32 %v159_v8, -100.0 }
  0x1a   : > { %v262_v10 = vpop.eup %261 }
  0x1b   : > { %v164_v11 = vmul.f32 0.6931472, %v262_v10 }
  0x1d   : > { %v170_v13 = vsel %vm169_vm0, %v167_v9, %v164_v11 }
  0x1e   : > { %v171_v14 = vmax.f32 %v170_v13, -100.0 }
  0x20   : > { %v172_v15 = vadd.f32 %v171_v14, %v160_v12 }
  0x22   : > { %v173_v16 = vsub.f32 0.0, %v172_v15 }
  0x24   : > { %175 = vst [vmem:[%s155_s20] sm:$0xff] %v173_v16 }
  0x25 PF: > { %s12_s9 = sadd.s32 1, %s269_s9  }
  0x26   : > { %p9_p4 = scmp.ge.s32.totalorder %s12_s9, 4  }
  0x28   :  { %11 = sbr.rel (!%p9_p4) target bundleno = 1 (0x1), region = 61 }

</bundles_post_ra>
